<compile_context>
chip_gen: v5e
topology: v5e:2x2
jax: 0.10.0
libtpu: 0.0.40
codegen_flags: <defaults>
</compile_context>

<pallas_src>
import jax
import jax.numpy as jnp
from jax.experimental import pallas as pl
from jax.experimental.pallas import tpu as pltpu


_DEFAULT_CHUNK = 512   # matmul N per inner step (multiple of 128; 256 ok on v5e)


def _vmem_capacity_bytes():
    try:
        return int(pltpu.get_tpu_info().vmem_capacity_bytes)
    except Exception:                      # conservative fallback = v7x per-core VMEM
        return 64 * 2 ** 20


def _pick_l_tile(L, C_in, C_out):
    """Largest L tile whose per-step footprint fits ~1/4 of physical VMEM."""
    budget = _vmem_capacity_bytes() // 4
    # double-buffered f32 x/out pipeline blocks + bf16 x/h1 scratch, per length unit
    per_len = 2 * 4 * (C_in + C_out) + 2 * (C_in + C_out)
    tl = budget // max(per_len, 1)
    if tl >= L:
        return L
    return max(128, (tl // 128) * 128)


def _for_chunks(extent, chunk, body):
    """Run body(start, size) over [0, extent): full chunks via lax.fori_loop
    (no trace-time unrolling, bounded vreg live ranges) + one static remainder."""
    n_full = extent // chunk
    rem = extent - n_full * chunk
    if n_full > 0:
        def _iter(i, carry):
            body(pl.multiple_of(i * chunk, chunk), chunk)
            return carry
        jax.lax.fori_loop(0, n_full, _iter, 0)
    if rem > 0:
        body(n_full * chunk, rem)


def _build_kernel(*, C_in, C_out, K, dilation, pad, L, TL, has_ds, has_halo,
                  chunk):
    """One grid step = one (batch, L-tile) pair.

    Ref views (leading size-1 dims squeezed by the BlockSpecs):
      x_ref  : (C_in, TL)   f32    current x tile
      xl/xr  : (C_in, HALO) f32    left/right x halo (only if pad > 0)
      w1_ref : (K, C_out, C_in)  bf16   conv1 taps
      w2_ref : (K, C_out, C_out) bf16   conv2 taps
      b*_ref : (C_out, 1)  f32
      wd/bd  : 1x1 downsample (optional)
      o_ref  : (C_out, TL) f32
      xwin   : VMEM (C_in,  TL+2*HALO) bf16   staged x (tile + halo)
      h1win  : VMEM (C_out, TL+2*pad)  bf16   conv1 activation (tile + halo)
    """
    HALO = 2 * pad
    TLX = TL + 2 * HALO          # x window length
    TH1 = TL + 2 * pad           # h1 window length

    def kernel(*refs):
        it = iter(refs)
        x_ref = next(it)
        xl_ref = next(it) if has_halo else None
        xr_ref = next(it) if has_halo else None
        w1_ref = next(it)
        b1_ref = next(it)
        w2_ref = next(it)
        b2_ref = next(it)
        wd_ref = next(it) if has_ds else None
        bd_ref = next(it) if has_ds else None
        o_ref = next(it)
        xwin = next(it)
        h1win = next(it)

        t = pl.program_id(1)

        # Stage x (halo + tile) into bf16 VMEM. This is also the f32->bf16 cast
        # the MXU needs; each staged element is read K times by the tap matmuls.
        if has_halo:
            xwin[:, 0:HALO] = xl_ref[...].astype(jnp.bfloat16)
            xwin[:, HALO + TL:TLX] = xr_ref[...].astype(jnp.bfloat16)
        xwin[:, HALO:HALO + TL] = x_ref[...].astype(jnp.bfloat16)

        # Hoisted, loop-invariant weight loads and bias broadcasts.
        w1_taps = [w1_ref[k] for k in range(K)]      # K x (C_out, C_in) bf16
        w2_taps = [w2_ref[k] for k in range(K)]      # K x (C_out, C_out) bf16
        ch1 = min(chunk, TH1)
        ch2 = min(chunk, TL)
        b1_bc = jnp.broadcast_to(b1_ref[...], (C_out, ch1))
        b2_bc = jnp.broadcast_to(b2_ref[...], (C_out, ch2))
        if has_ds:
            wd = wd_ref[...]
            bd_bc = jnp.broadcast_to(bd_ref[...], (C_out, ch2))

        h1_base = t * TL - pad    # global sequence position of h1win column 0

        # ---- conv1 (dilated) + bias + ReLU, sequence-masked -----------------
        def conv1_chunk(j0, cl):
            acc = jnp.dot(w1_taps[0], xwin[:, pl.ds(j0, cl)],
                          preferred_element_type=jnp.float32)
            for k in range(1, K):
                acc += jnp.dot(w1_taps[k],
                               xwin[:, pl.ds(j0 + k * dilation, cl)],
                               preferred_element_type=jnp.float32)
            h1 = jnp.maximum(acc + b1_bc[:, :cl], 0.0)
            # conv2's zero padding is w.r.t. the sequence [0, L): zero h1 outside
            # it (left/right conv padding and the zero-padded tail when L % TL != 0).
            pos = h1_base + j0 + jax.lax.broadcasted_iota(jnp.int32, (C_out, cl), 1)
            h1 = jnp.where((pos >= 0) & (pos < L), h1, 0.0)
            h1win[:, pl.ds(j0, cl)] = h1.astype(jnp.bfloat16)

        _for_chunks(TH1, chunk, conv1_chunk)

        # ---- conv2 (dilated) + bias + ReLU, fused residual + final ReLU -----
        def conv2_chunk(m0, cl):
            acc = jnp.dot(w2_taps[0], h1win[:, pl.ds(m0, cl)],
                          preferred_element_type=jnp.float32)
            for k in range(1, K):
                acc += jnp.dot(w2_taps[k],
                               h1win[:, pl.ds(m0 + k * dilation, cl)],
                               preferred_element_type=jnp.float32)
            h2 = jnp.maximum(acc + b2_bc[:, :cl], 0.0)
            if has_ds:
                res = jnp.dot(wd, xwin[:, pl.ds(HALO + m0, cl)],
                              preferred_element_type=jnp.float32) + bd_bc[:, :cl]
            else:
                res = x_ref[:, pl.ds(m0, cl)]          # identity residual, f32
            o_ref[:, pl.ds(m0, cl)] = jnp.maximum(h2 + res, 0.0)

        _for_chunks(TL, chunk, conv2_chunk)

    return kernel


def temporal_block_forward(x, params, *, kernel_size, dilation, l_tile=None,
                           chunk=_DEFAULT_CHUNK):
    """TemporalBlock forward. x: (B, C_in, L) float32 (PyTorch NCL layout)."""
    B, C_in, L = x.shape
    K = int(kernel_size)
    C_out = params["w1"].shape[0]
    pad = (K - 1) * dilation // 2
    # `out + res` only type-checks when the convs preserve length.
    assert (K - 1) * dilation % 2 == 0, "residual add needs 'same' length"
    has_ds = params.get("wd") is not None
    if not has_ds:
        assert C_in == C_out, "identity residual needs matching channel counts"
    assert chunk > 0

    x = x.astype(jnp.float32)

    TL = int(l_tile) if l_tile is not None else _pick_l_tile(L, C_in, C_out)
    TL = min(TL, L)
    if TL != L:
        assert TL % 128 == 0, "l_tile must be a multiple of 128 (or >= L)"
    n_lt = pl.cdiv(L, TL)
    Lc = n_lt * TL
    HALO = 2 * pad
    has_halo = pad > 0

    x_c = x if Lc == L else jnp.pad(x, ((0, 0), (0, 0), (0, Lc - L)))

    args = [x_c]
    in_specs = [pl.BlockSpec((None, C_in, TL), lambda b, t: (b, 0, t))]

    if has_halo:
        # Halo gather is wrapper-side layout plumbing done once per call; each
        # halo is only HALO = (K-1)*dilation columns wide per tile.
        xp = jnp.pad(x_c, ((0, 0), (0, 0), (HALO, HALO)))
        xl = jnp.stack([xp[:, :, t * TL:t * TL + HALO]
                        for t in range(n_lt)], axis=1)
        xr = jnp.stack([xp[:, :, (t + 1) * TL + HALO:(t + 1) * TL + 2 * HALO]
                        for t in range(n_lt)], axis=1)
        args += [xl, xr]
        halo_spec = pl.BlockSpec((None, None, C_in, HALO),
                                 lambda b, t: (b, t, 0, 0))
        in_specs += [halo_spec, halo_spec]

    # Tap-major weights, pre-cast to bf16 for the MXU (f32 accumulation in-kernel).
    w1 = jnp.transpose(params["w1"], (2, 0, 1)).astype(jnp.bfloat16)   # (K, C_out, C_in)
    w2 = jnp.transpose(params["w2"], (2, 0, 1)).astype(jnp.bfloat16)   # (K, C_out, C_out)
    b1 = params["b1"].reshape(C_out, 1).astype(jnp.float32)
    b2 = params["b2"].reshape(C_out, 1).astype(jnp.float32)
    args += [w1, b1, w2, b2]
    in_specs += [
        pl.BlockSpec((K, C_out, C_in), lambda b, t: (0, 0, 0)),
        pl.BlockSpec((C_out, 1), lambda b, t: (0, 0)),
        pl.BlockSpec((K, C_out, C_out), lambda b, t: (0, 0, 0)),
        pl.BlockSpec((C_out, 1), lambda b, t: (0, 0)),
    ]
    if has_ds:
        wd = params["wd"].reshape(C_out, C_in).astype(jnp.bfloat16)
        bd = params["bd"].reshape(C_out, 1).astype(jnp.float32)
        args += [wd, bd]
        in_specs += [pl.BlockSpec((C_out, C_in), lambda b, t: (0, 0)),
                     pl.BlockSpec((C_out, 1), lambda b, t: (0, 0))]

    kernel = _build_kernel(C_in=C_in, C_out=C_out, K=K, dilation=dilation,
                           pad=pad, L=L, TL=TL, has_ds=has_ds,
                           has_halo=has_halo, chunk=chunk)

    # VMEM accounting: double-buffered pipeline blocks + bf16 scratch + weights
    # + in-flight matmul temporaries; limit derived from physical capacity.
    tmp = 2 * 4 * (3 * C_out + C_in) * min(chunk, TL + 2 * pad)
    need = (2 * 4 * (C_in + C_out) * TL                                # x / out blocks
            + 2 * (C_in * (TL + 2 * HALO) + C_out * (TL + 2 * pad))    # bf16 scratch
            + 2 * 2 * K * C_out * (C_in + C_out)                       # conv weights
            + (2 * 2 * C_out * C_in if has_ds else 0)                  # downsample weight
            + 2 * 4 * 4 * C_out                                        # biases
            + (2 * 4 * 2 * C_in * HALO if has_halo else 0)             # halo blocks
            + tmp)
    cap = _vmem_capacity_bytes()
    vmem_limit = int(min(int(0.8 * cap), max(2 * need, 16 * 2 ** 20)))

    out = pl.pallas_call(
        kernel,
        out_shape=jax.ShapeDtypeStruct((B, C_out, Lc), jnp.float32),
        grid_spec=pltpu.PrefetchScalarGridSpec(
            num_scalar_prefetch=0,
            grid=(B, n_lt),
            in_specs=in_specs,
            out_specs=pl.BlockSpec((None, C_out, TL), lambda b, t: (b, 0, t)),
            scratch_shapes=[
                pltpu.VMEM((C_in, TL + 2 * HALO), jnp.bfloat16),
                pltpu.VMEM((C_out, TL + 2 * pad), jnp.bfloat16),
            ],
        ),
        compiler_params=pltpu.CompilerParams(
            dimension_semantics=("parallel", "parallel"),
            vmem_limit_bytes=vmem_limit),
    )(*args)

    return out if Lc == L else out[:, :, :L]


def _reference_forward(x_ncl, params, *, kernel_size, dilation):
    """Pure-JAX f32 reference (lax.conv_general_dilated) for correctness checks."""
    padding = (kernel_size - 1) * dilation // 2

    def conv(x, w, b, dil, pad_amt):
        y = jax.lax.conv_general_dilated(
            x, w, window_strides=(1,), padding=[(pad_amt, pad_amt)],
            rhs_dilation=(dil,), dimension_numbers=("NCH", "OIH", "NCH"))
        return y + b[None, :, None]

    h = jax.nn.relu(conv(x_ncl, params["w1"], params["b1"], dilation, padding))
    h = jax.nn.relu(conv(h, params["w2"], params["b2"], dilation, padding))
    if params.get("wd") is not None:
        res = conv(x_ncl, params["wd"], params["bd"], 1, 0)
    else:
        res = x_ncl
    return jax.nn.relu(h + res)


if __name__ == "__main__":
    K, d = 3, 2
    key = jax.random.PRNGKey(0)
    keys = jax.random.split(key, 20)

    def make_params(kidx, c_in, c_out, downsample):
        return {
            "w1": 0.1 * jax.random.normal(keys[kidx + 0], (c_out, c_in, K), jnp.float32),
            "b1": 0.1 * jax.random.normal(keys[kidx + 1], (c_out,), jnp.float32),
            "w2": 0.1 * jax.random.normal(keys[kidx + 2], (c_out, c_out, K), jnp.float32),
            "b2": 0.1 * jax.random.normal(keys[kidx + 3], (c_out,), jnp.float32),
            "wd": (0.1 * jax.random.normal(keys[kidx + 4], (c_out, c_in, 1), jnp.float32)
                   if downsample else None),
            "bd": (0.1 * jax.random.normal(keys[kidx + 5], (c_out,), jnp.float32)
                   if downsample else None),
        }

    def check(x, params, **kw):
        out = jax.block_until_ready(
            temporal_block_forward(x, params, kernel_size=K, dilation=d, **kw))
        ref = _reference_forward(x, params, kernel_size=K, dilation=d)
        assert out.shape == ref.shape, (out.shape, ref.shape)
        err = float(jnp.max(jnp.abs(out - ref)))
        # bf16 matmul operands -> allow ~1e-2-level deviation from f32 reference.
        assert err < 5e-2, f"max abs err {err}"

    # Case 1: n_inputs != n_outputs -> 1x1 downsample residual (single L tile).
    B, C_in, C_out, L = 2, 4, 8, 16
    p1 = make_params(0, C_in, C_out, True)
    x1 = jax.random.normal(keys[12], (B, C_in, L), jnp.float32)
    check(x1, p1)

    # Case 2: n_inputs == n_outputs -> identity residual (single L tile).
    C = 8
    p2 = make_params(6, C, C, False)
    x2 = jax.random.normal(keys[13], (B, C, L), jnp.float32)
    check(x2, p2)

    # Case 3: multi-tile L (exercises halo exchange, fori_loop chunking,
    # remainder chunks and sequence masking), still small shapes.
    L3 = 256
    p3 = make_params(14, C, C, False)
    x3 = jax.random.normal(keys[18], (B, C, L3), jnp.float32)
    check(x3, p3, l_tile=128, chunk=64)

    print("KERNEL_OK")
</pallas_src>

<mosaic_0001>
module attributes {stable_mosaic.version = 11 : i64} {
  func.func @kernel(%arg0: i32, %arg1: i32, %arg2: memref<1x4x16xf32, #tpu.memory_space<vmem>>, %arg3: memref<1x1x4x4xf32, #tpu.memory_space<vmem>>, %arg4: memref<1x1x4x4xf32, #tpu.memory_space<vmem>>, %arg5: memref<3x8x4xbf16, #tpu.memory_space<vmem>>, %arg6: memref<8x1xf32, #tpu.memory_space<vmem>>, %arg7: memref<3x8x8xbf16, #tpu.memory_space<vmem>>, %arg8: memref<8x1xf32, #tpu.memory_space<vmem>>, %arg9: memref<8x4xbf16, #tpu.memory_space<vmem>>, %arg10: memref<8x1xf32, #tpu.memory_space<vmem>>, %arg11: memref<1x8x16xf32, #tpu.memory_space<vmem>>, %arg12: memref<4x24xbf16, #tpu.memory_space<vmem>>, %arg13: memref<8x20xbf16, #tpu.memory_space<vmem>>) attributes {dimension_semantics = [#tpu.dimension_semantics<parallel>, #tpu.dimension_semantics<parallel>], iteration_bounds = array<i64: 2, 1>, scalar_prefetch = 0 : i64, scratch_operands = 2 : i64, tpu.core_type = #tpu.core_type<tc>, window_params = [{transform_indices = @transform_0, window_bounds = array<i64: 1, 4, 16>}, {transform_indices = @transform_1, window_bounds = array<i64: 1, 1, 4, 4>}, {transform_indices = @transform_2, window_bounds = array<i64: 1, 1, 4, 4>}, {pipeline_mode = #tpu.pipeline_mode<synchronous>, transform_indices = @transform_3, window_bounds = array<i64: 3, 8, 4>}, {pipeline_mode = #tpu.pipeline_mode<synchronous>, transform_indices = @transform_4, window_bounds = array<i64: 8, 1>}, {pipeline_mode = #tpu.pipeline_mode<synchronous>, transform_indices = @transform_5, window_bounds = array<i64: 3, 8, 8>}, {pipeline_mode = #tpu.pipeline_mode<synchronous>, transform_indices = @transform_6, window_bounds = array<i64: 8, 1>}, {pipeline_mode = #tpu.pipeline_mode<synchronous>, transform_indices = @transform_7, window_bounds = array<i64: 8, 4>}, {pipeline_mode = #tpu.pipeline_mode<synchronous>, transform_indices = @transform_8, window_bounds = array<i64: 8, 1>}, {transform_indices = @transform_9, window_bounds = array<i64: 1, 8, 16>}]} {
    %c0 = arith.constant 0 : index
    %c0_0 = arith.constant 0 : index
    %c0_1 = arith.constant 0 : index
    %c0_2 = arith.constant 0 : index
    %0 = vector.load %arg3[%c0, %c0_0, %c0_1, %c0_2] : memref<1x1x4x4xf32, #tpu.memory_space<vmem>>, vector<1x1x4x4xf32>
    %1 = vector.shape_cast %0 : vector<1x1x4x4xf32> to vector<4x4xf32>
    %2 = arith.truncf %1 : vector<4x4xf32> to vector<4x4xbf16>
    %c0_3 = arith.constant 0 : index
    %c0_4 = arith.constant 0 : index
    %3 = vector.load %arg12[%c0_3, %c0_4] : memref<4x24xbf16, #tpu.memory_space<vmem>>, vector<4x4xbf16>
    tpu.vector_store %arg12[%c0_3, %c0_4], %2 {strides = array<i32>} : memref<4x24xbf16, #tpu.memory_space<vmem>>, vector<4x4xbf16>,
    %c0_5 = arith.constant 0 : index
    %c0_6 = arith.constant 0 : index
    %c0_7 = arith.constant 0 : index
    %c0_8 = arith.constant 0 : index
    %4 = vector.load %arg4[%c0_5, %c0_6, %c0_7, %c0_8] : memref<1x1x4x4xf32, #tpu.memory_space<vmem>>, vector<1x1x4x4xf32>
    %5 = vector.shape_cast %4 : vector<1x1x4x4xf32> to vector<4x4xf32>
    %6 = arith.truncf %5 : vector<4x4xf32> to vector<4x4xbf16>
    %c0_9 = arith.constant 0 : index
    %c20 = arith.constant 20 : index
    %7 = vector.load %arg12[%c0_9, %c20] : memref<4x24xbf16, #tpu.memory_space<vmem>>, vector<4x4xbf16>
    tpu.vector_store %arg12[%c0_9, %c20], %6 {strides = array<i32>} : memref<4x24xbf16, #tpu.memory_space<vmem>>, vector<4x4xbf16>,
    %c0_10 = arith.constant 0 : index
    %c0_11 = arith.constant 0 : index
    %c0_12 = arith.constant 0 : index
    %8 = vector.load %arg2[%c0_10, %c0_11, %c0_12] : memref<1x4x16xf32, #tpu.memory_space<vmem>>, vector<1x4x16xf32>
    %9 = vector.shape_cast %8 : vector<1x4x16xf32> to vector<4x16xf32>
    %10 = arith.truncf %9 : vector<4x16xf32> to vector<4x16xbf16>
    %c0_13 = arith.constant 0 : index
    %c4 = arith.constant 4 : index
    %11 = vector.load %arg12[%c0_13, %c4] : memref<4x24xbf16, #tpu.memory_space<vmem>>, vector<4x16xbf16>
    tpu.vector_store %arg12[%c0_13, %c4], %10 {strides = array<i32>} : memref<4x24xbf16, #tpu.memory_space<vmem>>, vector<4x16xbf16>,
    %c0_14 = arith.constant 0 : index
    %c0_15 = arith.constant 0 : index
    %c0_16 = arith.constant 0 : index
    %12 = vector.load %arg5[%c0_14, %c0_15, %c0_16] : memref<3x8x4xbf16, #tpu.memory_space<vmem>>, vector<1x8x4xbf16>
    %13 = vector.shape_cast %12 : vector<1x8x4xbf16> to vector<8x4xbf16>
    %c1 = arith.constant 1 : index
    %c0_17 = arith.constant 0 : index
    %c0_18 = arith.constant 0 : index
    %14 = vector.load %arg5[%c1, %c0_17, %c0_18] : memref<3x8x4xbf16, #tpu.memory_space<vmem>>, vector<1x8x4xbf16>
    %15 = vector.shape_cast %14 : vector<1x8x4xbf16> to vector<8x4xbf16>
    %c2 = arith.constant 2 : index
    %c0_19 = arith.constant 0 : index
    %c0_20 = arith.constant 0 : index
    %16 = vector.load %arg5[%c2, %c0_19, %c0_20] : memref<3x8x4xbf16, #tpu.memory_space<vmem>>, vector<1x8x4xbf16>
    %17 = vector.shape_cast %16 : vector<1x8x4xbf16> to vector<8x4xbf16>
    %c0_21 = arith.constant 0 : index
    %c0_22 = arith.constant 0 : index
    %c0_23 = arith.constant 0 : index
    %18 = vector.load %arg7[%c0_21, %c0_22, %c0_23] : memref<3x8x8xbf16, #tpu.memory_space<vmem>>, vector<1x8x8xbf16>
    %19 = vector.shape_cast %18 : vector<1x8x8xbf16> to vector<8x8xbf16>
    %c1_24 = arith.constant 1 : index
    %c0_25 = arith.constant 0 : index
    %c0_26 = arith.constant 0 : index
    %20 = vector.load %arg7[%c1_24, %c0_25, %c0_26] : memref<3x8x8xbf16, #tpu.memory_space<vmem>>, vector<1x8x8xbf16>
    %21 = vector.shape_cast %20 : vector<1x8x8xbf16> to vector<8x8xbf16>
    %c2_27 = arith.constant 2 : index
    %c0_28 = arith.constant 0 : index
    %c0_29 = arith.constant 0 : index
    %22 = vector.load %arg7[%c2_27, %c0_28, %c0_29] : memref<3x8x8xbf16, #tpu.memory_space<vmem>>, vector<1x8x8xbf16>
    %23 = vector.shape_cast %22 : vector<1x8x8xbf16> to vector<8x8xbf16>
    %c0_30 = arith.constant 0 : index
    %c0_31 = arith.constant 0 : index
    %24 = vector.load %arg6[%c0_30, %c0_31] : memref<8x1xf32, #tpu.memory_space<vmem>>, vector<8x1xf32>
    %25 = vector.shape_cast %24 : vector<8x1xf32> to vector<8x1xf32>
    %26 = vector.broadcast %25 : vector<8x1xf32> to vector<8x20xf32>
    %c0_32 = arith.constant 0 : index
    %c0_33 = arith.constant 0 : index
    %27 = vector.load %arg8[%c0_32, %c0_33] : memref<8x1xf32, #tpu.memory_space<vmem>>, vector<8x1xf32>
    %28 = vector.shape_cast %27 : vector<8x1xf32> to vector<8x1xf32>
    %29 = vector.broadcast %28 : vector<8x1xf32> to vector<8x16xf32>
    %c0_34 = arith.constant 0 : index
    %c0_35 = arith.constant 0 : index
    %30 = vector.load %arg9[%c0_34, %c0_35] : memref<8x4xbf16, #tpu.memory_space<vmem>>, vector<8x4xbf16>
    %c0_36 = arith.constant 0 : index
    %c0_37 = arith.constant 0 : index
    %31 = vector.load %arg10[%c0_36, %c0_37] : memref<8x1xf32, #tpu.memory_space<vmem>>, vector<8x1xf32>
    %32 = vector.shape_cast %31 : vector<8x1xf32> to vector<8x1xf32>
    %33 = vector.broadcast %32 : vector<8x1xf32> to vector<8x16xf32>
    %c16_i32 = arith.constant 16 : i32
    %34 = arith.muli %arg1, %c16_i32 : i32
    %c2_i32 = arith.constant 2 : i32
    %35 = arith.subi %34, %c2_i32 : i32
    %c0_38 = arith.constant 0 : index
    %c0_39 = arith.constant 0 : index
    %36 = vector.load %arg12[%c0_38, %c0_39] : memref<4x24xbf16, #tpu.memory_space<vmem>>, vector<4x20xbf16>
    %cst = arith.constant dense<0.000000e+00> : vector<8x20xf32>
    %37 = tpu.matmul %13, %36, %cst {dimension_numbers = #tpu.dot_dimension_numbers<[1], [0], [0], [1], [0, 0, 1, 1], [], []>} : vector<8x4xbf16>, vector<4x20xbf16>, vector<8x20xf32> -> vector<8x20xf32>
    %c0_40 = arith.constant 0 : index
    %c2_41 = arith.constant 2 : index
    %38 = vector.load %arg12[%c0_40, %c2_41] : memref<4x24xbf16, #tpu.memory_space<vmem>>, vector<4x20xbf16>
    %cst_42 = arith.constant dense<0.000000e+00> : vector<8x20xf32>
    %39 = tpu.matmul %15, %38, %cst_42 {dimension_numbers = #tpu.dot_dimension_numbers<[1], [0], [0], [1], [0, 0, 1, 1], [], []>} : vector<8x4xbf16>, vector<4x20xbf16>, vector<8x20xf32> -> vector<8x20xf32>
    %40 = arith.addf %37, %39 : vector<8x20xf32>
    %c0_43 = arith.constant 0 : index
    %c4_44 = arith.constant 4 : index
    %41 = vector.load %arg12[%c0_43, %c4_44] : memref<4x24xbf16, #tpu.memory_space<vmem>>, vector<4x20xbf16>
    %cst_45 = arith.constant dense<0.000000e+00> : vector<8x20xf32>
    %42 = tpu.matmul %17, %41, %cst_45 {dimension_numbers = #tpu.dot_dimension_numbers<[1], [0], [0], [1], [0, 0, 1, 1], [], []>} : vector<8x4xbf16>, vector<4x20xbf16>, vector<8x20xf32> -> vector<8x20xf32>
    %43 = arith.addf %40, %42 : vector<8x20xf32>
    %44 = arith.addf %43, %26 : vector<8x20xf32>
    %cst_46 = arith.constant 0.000000e+00 : f32
    %45 = vector.broadcast %cst_46 : f32 to vector<8x20xf32>
    %46 = arith.maximumf %44, %45 : vector<8x20xf32>
    %c0_i32 = arith.constant 0 : i32
    %47 = arith.addi %35, %c0_i32 : i32
    %48 = tpu.iota {dimensions = array<i32: 1>} : vector<8x20xi32>
    %49 = vector.broadcast %47 : i32 to vector<8x20xi32>
    %50 = arith.addi %49, %48 : vector<8x20xi32>
    %c0_i32_47 = arith.constant 0 : i32
    %51 = vector.broadcast %c0_i32_47 : i32 to vector<8x20xi32>
    %52 = arith.cmpi sge, %50, %51 : vector<8x20xi32>
    %c16_i32_48 = arith.constant 16 : i32
    %53 = vector.broadcast %c16_i32_48 : i32 to vector<8x20xi32>
    %54 = arith.cmpi slt, %50, %53 : vector<8x20xi32>
    %55 = arith.andi %52, %54 : vector<8x20xi1>
    %cst_49 = arith.constant 0.000000e+00 : f32
    %56 = vector.broadcast %cst_49 : f32 to vector<8x20xf32>
    %57 = arith.select %55, %46, %56 : vector<8x20xi1>, vector<8x20xf32>
    %58 = arith.truncf %57 : vector<8x20xf32> to vector<8x20xbf16>
    %c0_50 = arith.constant 0 : index
    %c0_51 = arith.constant 0 : index
    %59 = vector.load %arg13[%c0_50, %c0_51] : memref<8x20xbf16, #tpu.memory_space<vmem>>, vector<8x20xbf16>
    tpu.vector_store %arg13[%c0_50, %c0_51], %58 {strides = array<i32>} : memref<8x20xbf16, #tpu.memory_space<vmem>>, vector<8x20xbf16>,
    %c0_52 = arith.constant 0 : index
    %c0_53 = arith.constant 0 : index
    %60 = vector.load %arg13[%c0_52, %c0_53] : memref<8x20xbf16, #tpu.memory_space<vmem>>, vector<8x16xbf16>
    %cst_54 = arith.constant dense<0.000000e+00> : vector<8x16xf32>
    %61 = tpu.matmul %19, %60, %cst_54 {dimension_numbers = #tpu.dot_dimension_numbers<[1], [0], [0], [1], [0, 0, 1, 1], [], []>} : vector<8x8xbf16>, vector<8x16xbf16>, vector<8x16xf32> -> vector<8x16xf32>
    %c0_55 = arith.constant 0 : index
    %c2_56 = arith.constant 2 : index
    %62 = vector.load %arg13[%c0_55, %c2_56] : memref<8x20xbf16, #tpu.memory_space<vmem>>, vector<8x16xbf16>
    %cst_57 = arith.constant dense<0.000000e+00> : vector<8x16xf32>
    %63 = tpu.matmul %21, %62, %cst_57 {dimension_numbers = #tpu.dot_dimension_numbers<[1], [0], [0], [1], [0, 0, 1, 1], [], []>} : vector<8x8xbf16>, vector<8x16xbf16>, vector<8x16xf32> -> vector<8x16xf32>
    %64 = arith.addf %61, %63 : vector<8x16xf32>
    %c0_58 = arith.constant 0 : index
    %c4_59 = arith.constant 4 : index
    %65 = vector.load %arg13[%c0_58, %c4_59] : memref<8x20xbf16, #tpu.memory_space<vmem>>, vector<8x16xbf16>
    %cst_60 = arith.constant dense<0.000000e+00> : vector<8x16xf32>
    %66 = tpu.matmul %23, %65, %cst_60 {dimension_numbers = #tpu.dot_dimension_numbers<[1], [0], [0], [1], [0, 0, 1, 1], [], []>} : vector<8x8xbf16>, vector<8x16xbf16>, vector<8x16xf32> -> vector<8x16xf32>
    %67 = arith.addf %64, %66 : vector<8x16xf32>
    %68 = arith.addf %67, %29 : vector<8x16xf32>
    %cst_61 = arith.constant 0.000000e+00 : f32
    %69 = vector.broadcast %cst_61 : f32 to vector<8x16xf32>
    %70 = arith.maximumf %68, %69 : vector<8x16xf32>
    %c0_62 = arith.constant 0 : index
    %c4_63 = arith.constant 4 : index
    %71 = vector.load %arg12[%c0_62, %c4_63] : memref<4x24xbf16, #tpu.memory_space<vmem>>, vector<4x16xbf16>
    %cst_64 = arith.constant dense<0.000000e+00> : vector<8x16xf32>
    %72 = tpu.matmul %30, %71, %cst_64 {dimension_numbers = #tpu.dot_dimension_numbers<[1], [0], [0], [1], [0, 0, 1, 1], [], []>} : vector<8x4xbf16>, vector<4x16xbf16>, vector<8x16xf32> -> vector<8x16xf32>
    %73 = arith.addf %72, %33 : vector<8x16xf32>
    %74 = arith.addf %70, %73 : vector<8x16xf32>
    %cst_65 = arith.constant 0.000000e+00 : f32
    %75 = vector.broadcast %cst_65 : f32 to vector<8x16xf32>
    %76 = arith.maximumf %74, %75 : vector<8x16xf32>
    %c0_66 = arith.constant 0 : index
    %c0_67 = arith.constant 0 : index
    %c0_68 = arith.constant 0 : index
    %77 = vector.load %arg11[%c0_66, %c0_67, %c0_68] : memref<1x8x16xf32, #tpu.memory_space<vmem>>, vector<1x8x16xf32>
    %78 = vector.shape_cast %77 : vector<1x8x16xf32> to vector<8x16xf32>
    %79 = vector.shape_cast %76 : vector<8x16xf32> to vector<1x8x16xf32>
    tpu.vector_store %arg11[%c0_66, %c0_67, %c0_68], %79 {strides = array<i32>} : memref<1x8x16xf32, #tpu.memory_space<vmem>>, vector<1x8x16xf32>,
    return
  }
  func.func @transform_0(%arg0: i32, %arg1: i32) -> (i32, i32, i32) {
    %c0_i32 = arith.constant 0 : i32
    %c0_i32_0 = arith.constant 0 : i32
    return %arg0, %c0_i32, %arg1 : i32, i32, i32
  }
  func.func @transform_1(%arg0: i32, %arg1: i32) -> (i32, i32, i32, i32) {
    %c0_i32 = arith.constant 0 : i32
    %c0_i32_0 = arith.constant 0 : i32
    %c0_i32_1 = arith.constant 0 : i32
    return %arg0, %arg1, %c0_i32, %c0_i32_0 : i32, i32, i32, i32
  }
  func.func @transform_2(%arg0: i32, %arg1: i32) -> (i32, i32, i32, i32) {
    %c0_i32 = arith.constant 0 : i32
    %c0_i32_0 = arith.constant 0 : i32
    %c0_i32_1 = arith.constant 0 : i32
    return %arg0, %arg1, %c0_i32, %c0_i32_0 : i32, i32, i32, i32
  }
  func.func @transform_3(%arg0: i32, %arg1: i32) -> (i32, i32, i32) {
    %c0_i32 = arith.constant 0 : i32
    %c0_i32_0 = arith.constant 0 : i32
    %c0_i32_1 = arith.constant 0 : i32
    %c0_i32_2 = arith.constant 0 : i32
    return %c0_i32, %c0_i32_0, %c0_i32_1 : i32, i32, i32
  }
  func.func @transform_4(%arg0: i32, %arg1: i32) -> (i32, i32) {
    %c0_i32 = arith.constant 0 : i32
    %c0_i32_0 = arith.constant 0 : i32
    %c0_i32_1 = arith.constant 0 : i32
    return %c0_i32, %c0_i32_0 : i32, i32
  }
  func.func @transform_5(%arg0: i32, %arg1: i32) -> (i32, i32, i32) {
    %c0_i32 = arith.constant 0 : i32
    %c0_i32_0 = arith.constant 0 : i32
    %c0_i32_1 = arith.constant 0 : i32
    %c0_i32_2 = arith.constant 0 : i32
    return %c0_i32, %c0_i32_0, %c0_i32_1 : i32, i32, i32
  }
  func.func @transform_6(%arg0: i32, %arg1: i32) -> (i32, i32) {
    %c0_i32 = arith.constant 0 : i32
    %c0_i32_0 = arith.constant 0 : i32
    %c0_i32_1 = arith.constant 0 : i32
    return %c0_i32, %c0_i32_0 : i32, i32
  }
  func.func @transform_7(%arg0: i32, %arg1: i32) -> (i32, i32) {
    %c0_i32 = arith.constant 0 : i32
    %c0_i32_0 = arith.constant 0 : i32
    %c0_i32_1 = arith.constant 0 : i32
    return %c0_i32, %c0_i32_0 : i32, i32
  }
  func.func @transform_8(%arg0: i32, %arg1: i32) -> (i32, i32) {
    %c0_i32 = arith.constant 0 : i32
    %c0_i32_0 = arith.constant 0 : i32
    %c0_i32_1 = arith.constant 0 : i32
    return %c0_i32, %c0_i32_0 : i32, i32
  }
  func.func @transform_9(%arg0: i32, %arg1: i32) -> (i32, i32, i32) {
    %c0_i32 = arith.constant 0 : i32
    %c0_i32_0 = arith.constant 0 : i32
    return %arg0, %c0_i32, %arg1 : i32, i32, i32
  }
}

</mosaic_0001>

<bundles_post_ra>
// kernel: tpu_custom_call.1
= control target key start
LH: loop header
LB: loop body
LE: loop exit
PB: predicated region body
PF: predicated region fallthrough
CT: control target
= control target key end

     0   :  { %14 = vsyncpa [#allocation5], 0  ;;  %s1150_s0 = inlined_call_operand.vmem [shape: f32[2,4,16], index: 0, kind: input, shape index: {}]   ;;  %s1151_s1 = inlined_call_operand.vmem [shape: f32[2,1,4,4], index: 1, kind: input, shape index: {}]   ;;  %s1152_s2 = inlined_call_operand.vmem [shape: f32[2,1,4,4], index: 2, kind: input, shape index: {}]   ;;  %s1153_s3 = inlined_call_operand.vmem [shape: bf16[3,8,4], index: 3, kind: input, shape index: {}]   ;;  %s1154_s4 = inlined_call_operand.vmem [shape: f32[8,1], index: 4, kind: input, shape index: {}]   ;;  %s1155_s5 = inlined_call_operand.vmem [shape: bf16[3,8,8], index: 5, kind: input, shape index: {}]   ;;  %s1156_s6 = inlined_call_operand.vmem [shape: f32[8,1], index: 6, kind: input, shape index: {}]   ;;  %s1157_s7 = inlined_call_operand.vmem [shape: bf16[8,4], index: 7, kind: input, shape index: {}]   ;;  %s1158_s8 = inlined_call_operand.vmem [shape: f32[8,1], index: 8, kind: input, shape index: {}]   ;;  %s1159_s9 = inlined_call_operand.hbm [shape: f32[2,8,16], index: 9, kind: output, shape index: {}]  }
   0x1   :  { %16 = vsyncpa [#allocation5 + $0x1], 0  ;;  %s996_s30 = smov 0   ;;  %s998_s10 = smov 0  }
   0x2   :  { %s1000_s11 = smov 0   ;;  %s1002_s12 = smov 0  }
   0x3   :  { %s1004_s13 = smov 0   ;;  %s1006_s14 = smov 0  }
   0x4 LB: > { %s775_s15 = sadd.s32 4294967295, %s939_s14   ;;  %s776_s16 = sadd.s32 4294967294, %s939_s14   ;;  %s939_s14 = sphi %s1006_s14, %s22_s14   ;;  %s935_s13 = sphi %s1004_s13, %s1166_s13   ;;  %s931_s12 = sphi %s1002_s12, %s1165_s12   ;;  %s927_s11 = sphi %s1000_s11, %s1164_s11   ;;  %s923_s10 = sphi %s998_s10, %s1163_s10   ;;  %s919_s30 = sphi %s996_s30, %s1162_s30  }
   0x5   : > { %s34_s17 = sadd.s32 1, %s935_s13  ;;  %s253_s18 = sadd.s32 1, %s927_s11 }
   0x6   : > { %p36_p0 = scmp.ge.s32.totalorder %s34_s17, 2  ;;  %p263_p1 = scmp.ne.s32.totalorder %s927_s11, %s923_s10 }
   0x7   : > { %p264_p2 = scmp.eq.s32.totalorder %s775_s15, 1  ;;  %p269_p3 = scmp.ne.s32.totalorder %s923_s10, %s919_s30 }
   0x8   : > { %s1168_s17 = smov (%p36_p0, %s34_s17), 0  ;;  %p270_p5 = scmp.eq.s32.totalorder %s776_s16, 1 }
   0x9   : > { %p1036_p4 = por %p264_p2, %p263_p1  ;;  %s248_s20 = ssub.s32 %s935_s13, %s1168_s17 }
   0xa   : > { %p779_p6 = scmp.ge.s32.totalorder %s939_s14, 1  ;;  %p251_p7 = scmp.eq.s32.totalorder %s248_s20, 0 }
   0xb   : > { %p1043_p8 = por %p270_p5, %p269_p3  ;;  %p336_p9 = scmp.lt.s32.totalorder %s939_s14, 3 }
   0xc   : > { %s1049_s22 = scalar_select %p251_p7, %s927_s11, %s253_s18  }
   0xd   : > { %p337_p10 = pnand %p779_p6, %p336_p9 }
   0xe   : > { %p388_p11 = scmp.lt.s32.totalorder (!%p337_p10), %s931_s12, 1  ;;  %s941_s16 = smov (!%p337_p10), 20  }
   0xf   : > { %340 = sbr.rel (%p337_p10) target bundleno = 711 (0x2c7), region = 56  ;;  %s942_s18 = smov (!%p337_p10), 4  }
  0x10   : > { %s944_s26 = smov (!%p337_p10), 126   ;;  %s796_s29 = sshll.u32 (!%p337_p10), %s931_s12, 3 }
  0x14   : > { %s389_s23 = scalar_select %p388_p11, %s931_s12, 1  ;;  %vm418_vm0 = vcmask 1041408   ;;  %vm412_vm1 = vcmask 25600   ;;  %vm426_vm2 = vcmask 189600   ;;  %vm439_vm3 = vcmask 156704   ;;  %v451_v20 = vld [vmem:[%s1154_s4] sm:$0xff] }
  0x15   : > { %v441_v19 = vld [vmem:[%s1153_s3] sm:$0xf]  ;;  %vm479_vm4 = vcmask 31744   ;;  %v945_v21 = vmov 0   ;;  %v785_v24 = vld [vmem:[%s1153_s3 + $0x8] sm:$0xf]  ;;  %v546_v32 = vlaneseq }
  0x16   : > { %s781_s24 = sshll.u32 %s389_s23, 2  ;;  %859 = vset.pattern.permute.xlu2 %v945_v21  ;;  %860 = vset.pattern.permute.xlu0 %v945_v21  ;;  %v784_v29 = vld [vmem:[%s1153_s3 + $0x4] sm:$0xf]  ;;  %vm555_vm8 = vcmask 158720   ;;  %vm567_vm9 = vcmask 1043456   ;;  %vm563_vm10 = vcmask 64512  }
  0x17   : > { %s408_s27 = scalar_lea.vmem %s1152_s2, %s781_s24  ;;  %s394_s15 = scalar_lea.vmem %s1150_s0, %s781_s24  ;;  %454 = vperm.xlu2 %859, %v451_v20   ;;  %v547_v33 = vand.u32 127, %v546_v32  ;;  %v457_v50 = vld [vmem:[%s1156_s6] sm:$0xff]  ;;  %v787_v59 = vld [vmem:[%s1155_s5 + $0x8] sm:$0xf]  ;;  %vm655_vm11 = vcmask 130048  }
  0x18   : > { %v414_v0 = vld [vmem:[%s408_s27] sm:$0xf]  ;;  %s401_s25 = scalar_lea.vmem %s1151_s1, %s781_s24  ;;  %s943_s24 = smov 124   ;;  %v786_v56 = vld [vmem:[%s1155_s5 + $0x4] sm:$0xf] }
  0x19   : > { %v428_v1 = vld [vmem:[%s394_s15] sm:$0xf]  ;;  %v415_v2 = vpack.c.bf16 %v414_v0, %v414_v0  ;;  %v549_v35 = vadd.s32 4294967294, %v547_v33  ;;  %s385_s27 = sand.u32 1, %s923_s10  }
  0x1a   : > { %v429_v4 = vpack.c.bf16 %v428_v1, %v428_v1  ;;  %v410_v8 = vld [vmem:[%s401_s25] sm:$0xf]  ;;  %s780_s28 = sshll.u32 %s385_s27, 3  ;;  %s658_s12 = scalar_lea.sflag [#allocation5], %s385_s27 }
  0x1b   : > { %v417_v3 = vrot.slane %v415_v2, 2  ;;  %v411_v9 = vpack.c.bf16 %v410_v8, %v410_v8  ;;  %vm550_vm5 = vcmp.ge.s32.totalorder %v549_v35, 0  ;;  %vm551_vm6 = vcmp.lt.s32.totalorder %v549_v35, 16  ;;  %v446_v51 = vld [vmem:[%s1155_s5] sm:$0xf] }
  0x1c   : > { %v431_v6 = vrot.slane %v429_v4, 2  ;;  %vm552_vm7 = vmand %vm550_vm5, %vm551_vm6  ;;  %v463_v52 = vld [vmem:[%s1157_s7] sm:$0xf] }
  0x1d   : > { %v421_v5 = vsel %vm418_vm0, %v415_v2, %v417_v3  ;;  %413 = vst.msk [vmem:[#allocation2] sm:$0x3] %vm412_vm1, %v411_v9  ;;  %v464_v53 = vld [vmem:[%s1158_s8] sm:$0xff] }
  0x1e   : > { %423 = vrot.lane.b32.xlu0 %v421_v5, %s941_s16  ;;  %v434_v7 = vsel %vm418_vm0, %v429_v4, %v431_v6 }
  0x26   : > { %436 = vrot.lane.b32.xlu0 %v434_v7, %s942_s18 }
  0x71   : > { %v455_v38 = vpop.permute.xlu2 %454 }
  0x90   : > { %v424_v10 = vpop.permute.xlu0 %423 }
  0x91   : > { %427 = vst.msk [vmem:[#allocation2] sm:$0x3] %vm426_vm2, %v424_v10 }
  0x98   : > { %v437_v11 = vpop.permute.xlu0 %436 }
  0x99   : > { %440 = vst.msk [vmem:[#allocation2] sm:$0x3] %vm439_vm3, %v437_v11 }
  0xa0   : > { %v472_v12 = vld [vmem:[#allocation2] sm:$0x3] }
  0xa1   : > { %474 = vst [vmem:[#allocation1] ss:$4 sm:$0xff] %v472_v12  ;;  %v502_v13 = vsel %vm418_vm0, %v472_v12, 0  ;;  %v517_v15 = vld [vmem:[#allocation2] sm:$0x3] }
  0xa2   : > { %511 = vmatpush.bf16.msra.mxu1 %v502_v13  ;;  %v627_v17 = vld [vmem:[#allocation2] sm:$0x3] }
  0xa5   : > { %789 = vmatmul.msk.bf16.vlgmr.msra.gmra.mxu1 %vm479_vm4, %v441_v19 }
  0xa8   : > { %v475_v14 = vld.sshfl [vmem:[#allocation1] sm:$0xff pattern:$0x73625140] }
  0xa9   : > { %519 = vst [vmem:[#allocation1] ss:$4 sm:$0xff] %v517_v15 }
  0xb0   : > { %v520_v16 = vld.sshfl [vmem:[#allocation1] sm:$0xff pattern:$0x73625140] }
  0xb1   : > { %522 = vrot.lane.b32.xlu1 %v520_v16, %s943_s24  ;;  %629 = vst [vmem:[#allocation1] ss:$4 sm:$0xff] %v627_v17 }
  0xb8   : > { %v630_v18 = vld.sshfl [vmem:[#allocation1] sm:$0xff pattern:$0x73625140] }
  0xb9   : > { %477 = vrot.lane.b32.xlu1 %v475_v14, %s944_s26  ;;  %632 = vrot.lane.b32.xlu0 %v630_v18, %s943_s24 }
  0xc1   : > { %467 = vperm.xlu0 %860, %v464_v53  }
 0x122   : > { %v513_v30 = vpop.f32.mrf.mxu1 }
 0x123   : > { %v523_v22 = vpop.permute.xlu1 %522 }
 0x124   : > { %v528_v23 = vsel %vm418_vm0, %v523_v22, 0 }
 0x125   : > { %537 = vmatpush.bf16.msra.mxu2 %v528_v23 }
 0x128   : > { %790 = vmatmul.msk.bf16.vlgmr.msra.gmra.mxu2 %vm479_vm4, %v785_v24 }
 0x12a   : > { %v515_v31 = vpop.f32.mrf.mxu1 }
 0x12b   : > { %v478_v25 = vpop.permute.xlu1 %477  ;;  %v633_v26 = vpop.permute.xlu0 %632 }
 0x12c   : > { %v484_v27 = vsel %vm418_vm0, %v478_v25, 0  ;;  %v638_v28 = vsel %vm418_vm0, %v633_v26, 0 }
 0x12d   : > { %493 = vmatpush.bf16.msra.mxu0 %v484_v27  ;;  %647 = vmatpush.bf16.msrb.mxu2 %v638_v28 }
 0x130   : > { %788 = vmatmul.msk.bf16.vlgmr.msra.gmra.mxu0 %vm479_vm4, %v784_v29 }
 0x133   : > { %v468_v4 = vpop.permute.xlu0 %467 }
 0x138   : > { %794 = vmatmul.msk.bf16.vlgmr.msrb.gmra.mxu2 %vm479_vm4, %v463_v52 }
 0x1ab   : > { %v539_v34 = vpop.f32.mrf.mxu2 }
 0x1ad   : > { %v495_v36 = vpop.f32.mrf.mxu0 }
 0x1ae   : > { %v514_v37 = vadd.f32 %v513_v30, %v495_v36 }
 0x1b0   : > { %v543_v39 = vadd.f32 %v539_v34, %v514_v37 }
 0x1b2   : > { %v544_v40 = vadd.f32 %v543_v39, %v455_v38 }
 0x1b3   : > { %v541_v41 = vpop.f32.mrf.mxu2 }
 0x1b4   : > { %v545_v42 = vmax.f32 %v544_v40, 0.0 }
 0x1b5   : > { %v497_v43 = vpop.f32.mrf.mxu0 }
 0x1b6   : > { %v553_v44 = vsel %vm552_vm7, %v545_v42, 0.0 }
 0x1b7   : > { %v554_v45 = vpack.c.bf16 %v553_v44, %v553_v44 }
 0x1b9   : > { %556 = vst.msk [vmem:[#allocation3] sm:$0xf] %vm555_vm8, %v554_v45 }
 0x1bb   : > { %v649_v61 = vpop.f32.mrf.mxu2 }
 0x1bc   : > { %v650_v8 = vadd.f32 %v649_v61, %v468_v4 }
 0x1c0   : > { %v557_v46 = vld [vmem:[#allocation3] sm:$0xf] }
 0x1c1   : > { %v559_v47 = vunpack.c.l.b16 %v557_v46  ;;  %v588_v48 = vsel %vm567_vm9, %v557_v46, 0 }
 0x1c2   : > { %597 = vmatpush.bf16.msrb.mxu0 %v588_v48 }
 0x1c3   : > { %v560_v49 = vpack.c.b16 %v559_v47, %v559_v47  ;;  %v651_v63 = vpop.f32.mrf.mxu2 }
 0x1c5   : > { %603 = vrot.lane.b32.xlu1 %v560_v49, %s943_s24  ;;  %561 = vrot.lane.b32.xlu2 %v560_v49, %s944_s26  ;;  %s669_s24 = scalar_lea.hbm %s1159_s9, %s796_s29  ;;  %s387_s26 = scalar_lea.vmem [#allocation4], %s780_s28 }
 0x1c6   : > { %792 = vmatmul.msk.bf16.vlgmr.msrb.gmra.mxu0 %vm563_vm10, %v446_v51  ;;  %s671_s18 = sshll.u32 %s387_s26, 4  ;;  %s673_s20 = sshll.u32 %s669_s24, 4  ;;  %s672_s18 = int_to_ptr.vmem [resolvable:$true] %s671_s18  ;;  %s674_s20 = int_to_ptr.hbm [resolvable:$true] %s673_s20 }
 0x1c7   : > { %s875_s23 = sshra.s32 %s674_s20, 4  ;;  %s881_s28 = scalar_lea.hbm %s1159_s9, 16  ;;  %s876_s23 = int_to_ptr.hbm [resolvable:$true] %s875_s23 }
 0x1c8   : > { %s877_s25 = scalar_lea.hbm %s876_s23, 8  ;;  %p882_p1 = scmp.lt.s32.totalorder %s876_s23, %s1159_s9 }
 0x1c9   : > { %p878_p12 = scmp.ne.s32.totalorder %s876_s23, %s877_s25  ;;  %p883_p2 = scmp.lt.s32.totalorder %s881_s28, %s877_s25 }
 0x1cb   : > { %p879_p13 = pnand %p878_p12, %p1036_p4  ;;  %p884_p3 = por %p883_p2, %p882_p1 }
 0x1cd   : > { %460 = vperm.xlu2 %859, %v457_v50   ;;  %p880_p0 = pneg %p879_p13 }
 0x1cf   : > { %p885_p5 = pnand %p884_p3, %p880_p0 }
 0x21f   : > { %v562_v54 = vpop.permute.xlu2 %561 }
 0x220   : > { %v569_v55 = vsel %vm567_vm9, %v562_v54, 0 }
 0x221   : > { %578 = vmatpush.bf16.msra.mxu3 %v569_v55 }
 0x224   : > { %791 = vmatmul.msk.bf16.vlgmr.msra.gmra.mxu3 %vm563_vm10, %v786_v56 }
 0x227   : > { %v461_v6 = vpop.permute.xlu2 %460 }
 0x237   : > { %v604_v57 = vpop.permute.xlu1 %603 }
 0x238   : > { %v609_v58 = vsel %vm567_vm9, %v604_v57, 0 }
 0x239   : > { %618 = vmatpush.bf16.msrb.mxu1 %v609_v58 }
 0x23c   : > { %793 = vmatmul.msk.bf16.vlgmr.msrb.gmra.mxu1 %vm563_vm10, %v787_v59 }
 0x243   : > { %v599_v60 = vpop.f32.mrf.mxu0 }
 0x24b   : > { %v601_v62 = vpop.f32.mrf.mxu0 }
 0x2a7   : > { %v580_v0 = vpop.f32.mrf.mxu3 }
 0x2a8   : > { %v600_v2 = vadd.f32 %v599_v60, %v580_v0 }
 0x2af   : > { %v582_v1 = vpop.f32.mrf.mxu3 }
 0x2b9   : > { %v620_v3 = vpop.f32.mrf.mxu1 }
 0x2ba   : > { %v624_v5 = vadd.f32 %v620_v3, %v600_v2 }
 0x2bc   : > { %v625_v7 = vadd.f32 %v624_v5, %v461_v6 }
 0x2be   : > { %v626_v9 = vmax.f32 %v625_v7, 0.0 }
 0x2c0   : > { %v653_v10 = vadd.f32 %v650_v8, %v626_v9 }
 0x2c1   : > { %v622_v11 = vpop.f32.mrf.mxu1 }
 0x2c2   : > { %v654_v12 = vmax.f32 %v653_v10, 0.0 }
 0x2c4   : > { %656 = vst.msk [vmem:[%s387_s26] sm:$0xff] %vm655_vm11, %v654_v12 }
 0x2c5   : > { %888 = shalt.err (!%p885_p5)
}
 0x2c6   : > { %799 = dma.vmem_to_hbm [thread:$0]  (%p1036_p4), %s672_s18, 128, %s674_s20, %s658_s12  }
 0x2c7 PF: > { %p805_p6 = scmp.ge.s32.totalorder %s939_s14, 2  ;;  %s685_s27 = sand.u32 1, %s919_s30  }
 0x2c8   : > { %s686_s26 = scalar_lea.sflag [#allocation5], %s685_s27 }
 0x2c9   : > { %p802_p7 = pnand %p805_p6, %p1043_p8 }
 0x2cb   : > { %p803_p9 = pneg %p802_p7 }
 0x2cd   : > { %914 = dma.done.wait (%p803_p9), %s686_s26, 128  }
 0x2ce   : > { %916 = vsyncadd (%p803_p9), %s686_s26, 4294967168  ;;  %s22_s14 = sadd.s32 1, %s939_s14   ;;  %s1162_s30 = smov %s923_s10 }
 0x2cf   : > { %p19_p10 = scmp.ge.s32.totalorder %s22_s14, 4   ;;  %s1163_s10 = smov %s927_s11 }
 0x2d0   : > { %s1164_s11 = smov %s1049_s22  ;;  %s1165_s12 = smov %s935_s13 }
 0x2d1   : > { %s1166_s13 = smov %s1168_s17  ;;  %21 = sbr.rel (!%p19_p10) target bundleno = 4 (0x4), region = 101 }
 0x2d6   :  { %692 = vsyncpa [#allocation5], 1 }
 0x2d7   :  { %694 = vsyncpa [#allocation5 + $0x1], 1 }

</bundles_post_ra>
